<compile_context>
chip_gen: v7x
topology: tpu7x:2x2x1
jax: 0.10.0
libtpu: 0.0.40
codegen_flags: <defaults>
</compile_context>

<pallas_src>
import functools

import jax
import jax.numpy as jnp
import numpy as np
from jax.experimental import pallas as pl
from jax.experimental.pallas import tpu as pltpu

LN_EPS = 1e-5


def _patch_embed_ln_kernel(p_ref, w_ref, scale_ref, o_ref):
    """One row-tile of patches: GEMM (MXU, bf16 in / f32 acc) + bias + LayerNorm."""
    x = jnp.dot(p_ref[...], w_ref[...], preferred_element_type=jnp.float32)
    x = x + scale_ref[0:1, :]                       # bias, broadcast (1, E)
    e = x.shape[-1]
    inv_e = 1.0 / e
    # One-pass LN statistics: the two lane (XLU) reductions are independent.
    s = jnp.sum(x, axis=-1, keepdims=True)
    ss = jnp.sum(x * x, axis=-1, keepdims=True)
    mu = s * inv_e
    var = ss * inv_e - mu * mu
    inv = jax.lax.rsqrt(var + LN_EPS)
    o_ref[...] = ((x - mu) * inv * scale_ref[1:2, :]        # gamma
                  + scale_ref[2:3, :]).astype(o_ref.dtype)  # beta


def _round_up(v, m):
    return ((v + m - 1) // m) * m


def _pick_tm(m, max_tm):
    """Row tile: as large as possible (each grid step costs ~0.35us overhead),
    but keep >= 2 blocks so v7x's two TensorCores both get work; multiple of 8
    sublanes (or the full extent for tiny M)."""
    if m <= 16:
        return m
    tm = min(max_tm, -(-m // 2))      # cdiv(m, 2)
    tm = _round_up(tm, 8)
    return min(tm, m)


def patch_embed_layernorm(patches, w, b, gamma, beta, *,
                          max_tm=1024, compute_dtype=jnp.bfloat16):
    """patches: (M, K) f32; w: (K, E); b/gamma/beta: (E,). Returns (M, E) f32."""
    M, K = patches.shape
    Kw, E = w.shape
    assert K == Kw

    # Zero-pad the contraction dim to a multiple of 128 lanes (exact for the
    # GEMM) and cast GEMM inputs to bf16; accumulation stays f32 on the MXU.
    K_pad = _round_up(K, 128)
    if K_pad != K:
        patches = jnp.pad(patches, ((0, 0), (0, K_pad - K)))
        w = jnp.pad(w, ((0, K_pad - K), (0, 0)))
    patches = patches.astype(compute_dtype)
    w = w.astype(compute_dtype)

    # bias / gamma / beta packed into one resident (8, E) f32 block
    # (rows 0..2 used; (8, E) matches the natural f32 tile, no masked loads).
    scale = (jnp.zeros((8, E), jnp.float32)
             .at[0].set(b).at[1].set(gamma).at[2].set(beta))

    tm = _pick_tm(M, max_tm)
    grid = (pl.cdiv(M, tm),)

    return pl.pallas_call(
        _patch_embed_ln_kernel,
        out_shape=jax.ShapeDtypeStruct((M, E), jnp.float32),
        grid_spec=pltpu.PrefetchScalarGridSpec(
            num_scalar_prefetch=0,
            grid=grid,
            in_specs=[
                pl.BlockSpec((tm, K_pad), lambda i: (i, 0)),   # patch row tile
                pl.BlockSpec((K_pad, E), lambda i: (0, 0)),    # weight, resident
                pl.BlockSpec((8, E), lambda i: (0, 0)),        # bias/gamma/beta
            ],
            out_specs=pl.BlockSpec((tm, E), lambda i: (i, 0)),
        ),
        compiler_params=pltpu.CompilerParams(
            dimension_semantics=("parallel",),
            # Let XLA fuse the patch-extraction transpose / pad / bf16-cast
            # into operand 0 instead of materializing the patch matrix in HBM.
            allow_input_fusion=[True, False, False],
        ),
    )(patches, w, scale)


def wrapper2d_forward(x, params, *, patch_size):
    """Forward of wrapper2D with output_raw=True.

    x: (B, C, H, W) float32 (NCHW, matching the PyTorch module).
    Returns: (B, num_patches, embed_dim) float32.
    """
    B, C, H, W = x.shape
    P = patch_size
    assert H % P == 0 and W % P == 0
    Hp, Wp = H // P, W // P
    # NCHW -> (B, Hp, Wp, C, P, P) -> (B*Np, C*P*P); flatten order (c, kh, kw)
    # matches PyTorch Conv2d weight (E, C, kh, kw). With allow_input_fusion
    # this glue is fused into the pallas_call operand (no HBM round trip).
    patches = (
        x.reshape(B, C, Hp, P, Wp, P)
         .transpose(0, 2, 4, 1, 3, 5)
         .reshape(B * Hp * Wp, C * P * P)
    )
    out = patch_embed_layernorm(
        patches,
        params["proj_w"],    # (C*P*P, embed_dim)
        params["proj_b"],    # (embed_dim,)
        params["ln_gamma"],  # (embed_dim,)
        params["ln_beta"],   # (embed_dim,)
    )
    return out.reshape(B, Hp * Wp, -1)


def _reference(x, params, *, patch_size, compute_dtype=jnp.bfloat16):
    """Pure-JAX reference (same math, same bf16 GEMM rounding, no Pallas)."""
    B, C, H, W = x.shape
    P = patch_size
    Hp, Wp = H // P, W // P
    patches = (
        x.reshape(B, C, Hp, P, Wp, P)
         .transpose(0, 2, 4, 1, 3, 5)
         .reshape(B * Hp * Wp, C * P * P)
    )
    y = jnp.dot(patches.astype(compute_dtype),
                params["proj_w"].astype(compute_dtype),
                preferred_element_type=jnp.float32) + params["proj_b"]
    mu = y.mean(-1, keepdims=True)
    var = ((y - mu) ** 2).mean(-1, keepdims=True)
    y = (y - mu) * jax.lax.rsqrt(var + LN_EPS)
    y = y * params["ln_gamma"] + params["ln_beta"]
    return y.reshape(B, Hp * Wp, -1)


if __name__ == "__main__":
    # Small synthetic shapes consistent with the module's forward:
    # batch=2, channels=4, spatial=16x16, patch_size=4 -> 16 patches/image,
    # embed_dim=128 (the 'base' Swin embed_dim from __init__).
    B, C, H, W = 2, 4, 16, 16
    PATCH = 4
    EMBED_DIM = 128

    key = jax.random.PRNGKey(0)
    kx, kw, kb, _, _ = jax.random.split(key, 5)

    x = jax.random.normal(kx, (B, C, H, W), dtype=jnp.float32)

    # Deterministic parameter init (shapes follow Embeddings2D.__init__):
    #   Conv2d(C, embed_dim, kernel=patch, stride=patch) weight (E, C, P, P)
    #   stored here pre-reshaped as a GEMM weight (C*P*P, E).
    fan_in = C * PATCH * PATCH
    params = {
        "proj_w": jax.random.normal(kw, (fan_in, EMBED_DIM), jnp.float32)
                  / np.sqrt(fan_in),
        "proj_b": jax.random.normal(kb, (EMBED_DIM,), jnp.float32) * 0.02,
        "ln_gamma": jnp.ones((EMBED_DIM,), jnp.float32),
        "ln_beta": jnp.zeros((EMBED_DIM,), jnp.float32),
    }

    fwd = jax.jit(functools.partial(wrapper2d_forward, patch_size=PATCH))
    out = jax.block_until_ready(fwd(x, params))

    expected_shape = (B, (H // PATCH) * (W // PATCH), EMBED_DIM)
    assert out.shape == expected_shape, (out.shape, expected_shape)

    ref = _reference(x, params, patch_size=PATCH)
    np.testing.assert_allclose(np.asarray(out), np.asarray(ref),
                               rtol=1e-3, atol=1e-3)

    print("KERNEL_OK")
</pallas_src>

<mosaic_0001>
module attributes {stable_mosaic.version = 11 : i64} {
  func.func @_patch_embed_ln_kernel(%arg0: i32, %arg1: memref<16x128xbf16, #tpu.memory_space<vmem>>, %arg2: memref<128x128xbf16, #tpu.memory_space<vmem>>, %arg3: memref<8x128xf32, #tpu.memory_space<vmem>>, %arg4: memref<16x128xf32, #tpu.memory_space<vmem>>) attributes {dimension_semantics = [#tpu.dimension_semantics<parallel>], iteration_bounds = array<i64: 2>, scalar_prefetch = 0 : i64, scratch_operands = 0 : i64, tpu.core_type = #tpu.core_type<tc>, window_params = [{transform_indices = @transform_0, window_bounds = array<i64: 16, 128>}, {pipeline_mode = #tpu.pipeline_mode<synchronous>, transform_indices = @transform_1, window_bounds = array<i64: 128, 128>}, {pipeline_mode = #tpu.pipeline_mode<synchronous>, transform_indices = @transform_2, window_bounds = array<i64: 8, 128>}, {transform_indices = @transform_3, window_bounds = array<i64: 16, 128>}]} {
    %c0 = arith.constant 0 : index
    %c0_0 = arith.constant 0 : index
    %0 = vector.load %arg1[%c0, %c0_0] : memref<16x128xbf16, #tpu.memory_space<vmem>>, vector<16x128xbf16>
    %c0_1 = arith.constant 0 : index
    %c0_2 = arith.constant 0 : index
    %1 = vector.load %arg2[%c0_1, %c0_2] : memref<128x128xbf16, #tpu.memory_space<vmem>>, vector<128x128xbf16>
    %cst = arith.constant dense<0.000000e+00> : vector<16x128xf32>
    %2 = tpu.matmul %0, %1, %cst {dimension_numbers = #tpu.dot_dimension_numbers<[1], [0], [0], [1], [0, 0, 1, 1], [], []>} : vector<16x128xbf16>, vector<128x128xbf16>, vector<16x128xf32> -> vector<16x128xf32>
    %c0_3 = arith.constant 0 : index
    %c0_4 = arith.constant 0 : index
    %3 = vector.load %arg3[%c0_3, %c0_4] : memref<8x128xf32, #tpu.memory_space<vmem>>, vector<1x128xf32>
    %4 = vector.broadcast %3 : vector<1x128xf32> to vector<16x128xf32>
    %5 = arith.addf %2, %4 : vector<16x128xf32>
    %cst_5 = arith.constant dense<0.000000e+00> : vector<16xf32>
    %6 = vector.multi_reduction <add>, %5, %cst_5 [1] : vector<16x128xf32> to vector<16xf32>
    %7 = vector.shape_cast %6 : vector<16xf32> to vector<16x1xf32>
    %8 = arith.mulf %5, %5 : vector<16x128xf32>
    %cst_6 = arith.constant dense<0.000000e+00> : vector<16xf32>
    %9 = vector.multi_reduction <add>, %8, %cst_6 [1] : vector<16x128xf32> to vector<16xf32>
    %10 = vector.shape_cast %9 : vector<16xf32> to vector<16x1xf32>
    %cst_7 = arith.constant 7.812500e-03 : f32
    %11 = vector.broadcast %cst_7 : f32 to vector<16x1xf32>
    %12 = arith.mulf %7, %11 : vector<16x1xf32>
    %cst_8 = arith.constant 7.812500e-03 : f32
    %13 = vector.broadcast %cst_8 : f32 to vector<16x1xf32>
    %14 = arith.mulf %10, %13 : vector<16x1xf32>
    %15 = arith.mulf %12, %12 : vector<16x1xf32>
    %16 = arith.subf %14, %15 : vector<16x1xf32>
    %cst_9 = arith.constant 9.99999974E-6 : f32
    %17 = vector.broadcast %cst_9 : f32 to vector<16x1xf32>
    %18 = arith.addf %16, %17 : vector<16x1xf32>
    %19 = math.rsqrt %18 : vector<16x1xf32>
    %20 = vector.broadcast %12 : vector<16x1xf32> to vector<16x128xf32>
    %21 = arith.subf %5, %20 : vector<16x128xf32>
    %22 = vector.broadcast %19 : vector<16x1xf32> to vector<16x128xf32>
    %23 = arith.mulf %21, %22 : vector<16x128xf32>
    %c1 = arith.constant 1 : index
    %c0_10 = arith.constant 0 : index
    %24 = vector.load %arg3[%c1, %c0_10] : memref<8x128xf32, #tpu.memory_space<vmem>>, vector<1x128xf32>
    %25 = vector.broadcast %24 : vector<1x128xf32> to vector<16x128xf32>
    %26 = arith.mulf %23, %25 : vector<16x128xf32>
    %c2 = arith.constant 2 : index
    %c0_11 = arith.constant 0 : index
    %27 = vector.load %arg3[%c2, %c0_11] : memref<8x128xf32, #tpu.memory_space<vmem>>, vector<1x128xf32>
    %28 = vector.broadcast %27 : vector<1x128xf32> to vector<16x128xf32>
    %29 = arith.addf %26, %28 : vector<16x128xf32>
    %c0_12 = arith.constant 0 : index
    %c0_13 = arith.constant 0 : index
    %30 = vector.load %arg4[%c0_12, %c0_13] : memref<16x128xf32, #tpu.memory_space<vmem>>, vector<16x128xf32>
    tpu.vector_store %arg4[%c0_12, %c0_13], %29 {strides = array<i32>} : memref<16x128xf32, #tpu.memory_space<vmem>>, vector<16x128xf32>,
    return
  }
  func.func @transform_0(%arg0: i32) -> (i32, i32) {
    %c0_i32 = arith.constant 0 : i32
    %c0_i32_0 = arith.constant 0 : i32
    return %arg0, %c0_i32 : i32, i32
  }
  func.func @transform_1(%arg0: i32) -> (i32, i32) {
    %c0_i32 = arith.constant 0 : i32
    %c0_i32_0 = arith.constant 0 : i32
    %c0_i32_1 = arith.constant 0 : i32
    return %c0_i32, %c0_i32_0 : i32, i32
  }
  func.func @transform_2(%arg0: i32) -> (i32, i32) {
    %c0_i32 = arith.constant 0 : i32
    %c0_i32_0 = arith.constant 0 : i32
    %c0_i32_1 = arith.constant 0 : i32
    return %c0_i32, %c0_i32_0 : i32, i32
  }
  func.func @transform_3(%arg0: i32) -> (i32, i32) {
    %c0_i32 = arith.constant 0 : i32
    %c0_i32_0 = arith.constant 0 : i32
    return %arg0, %c0_i32 : i32, i32
  }
}

</mosaic_0001>

<bundles_post_ra>
// kernel: wrapper2d_forward.2
= control target key start
LH: loop header
LB: loop body
LE: loop exit
PB: predicated region body
PF: predicated region fallthrough
CT: control target
= control target key end

     0   :  { %s804_s0 = inlined_call_operand.vmem [shape: bf16[128,128], index: 0, kind: input, shape index: {}]   ;;  %s805_s1 = inlined_call_operand.vmem [shape: f32[8,128], index: 1, kind: input, shape index: {}]   ;;  %s806_s2 = inlined_call_operand.vmem [shape: bf16[32,64], index: 2, kind: input, shape index: {}]   ;;  %s807_s3 = inlined_call_operand.<no memory space> [shape: bf16[], index: 3, kind: input, shape index: {}]   ;;  %s808_s4 = inlined_call_operand.hbm [shape: f32[32,128], index: 4, kind: output, shape index: {}]  }
   0x1   :  { %v9_v0 = vstv %s807_s3 }
   0x2   :  { %v665_v1 = vunpack.i.l.bf16 %v9_v0 }
   0x3   :  { %14 = vsyncpa [#allocation8], 0 }
   0x4   :  { %16 = vsyncpa [#allocation8 + $0x1], 0  ;;  %s667_s17 = smov 0   ;;  %s669_s18 = smov 0  }
   0x5   :  { %s671_s19 = smov 0   ;;  %s673_s20 = smov 0  }
   0x6 LB: > { %s688_s3 = sadd.s32 4294967295, %s630_s20   ;;  %s457_s21 = sadd.s32 4294967294, %s630_s20   ;;  %s630_s20 = sphi %s673_s20, %s814_s20   ;;  %s626_s19 = sphi %s671_s19, %s813_s19   ;;  %s622_s18 = sphi %s669_s18, %s812_s18   ;;  %s618_s17 = sphi %s667_s17, %s811_s17  }
   0x7   : > { %s692_s22 = sadd.s32 1, %s630_s20   ;;  %s97_s23 = sadd.s32 1, %s626_s19 }
   0x8   : > { %s94_s24 = ssub.s32 %s630_s20, %s692_s22  ;;  %p107_p0 = scmp.ne.s32.totalorder %s626_s19, %s622_s18 }
   0x9   : > { %p95_p1 = scmp.eq.s32.totalorder %s94_s24, 0  ;;  %p108_p2 = scmp.eq.s32.totalorder %s688_s3, 1 }
   0xa   : > { %p113_p3 = scmp.ne.s32.totalorder %s622_s18, %s618_s17  ;;  %p114_p4 = scmp.eq.s32.totalorder %s457_s21, 1 }
   0xb   : > { %s703_s25 = scalar_select %p95_p1, %s626_s19, %s97_s23  }
   0xc   : > { %p705_p5 = por %p108_p2, %p107_p0  ;;  %p709_p6 = por %p114_p4, %p113_p3 }
   0xd   : > { %p460_p7 = scmp.ge.s32.totalorder %s630_s20, 1  ;;  %p147_p8 = scmp.lt.s32.totalorder %s630_s20, 3 }
   0xf   : > { %p148_p9 = pnand %p460_p7, %p147_p8 }
  0x11   : > { %151 = sbr.rel (%p148_p9) target bundleno = 457 (0x1c9), region = 32 }
  0x18   : > { %v555_v2 = vld [vmem:[%s804_s0] sm:$0xff]   ;;  %v632_v3 = vmov 0.0   ;;  %v190_v4 = vlaneseq  ;;  %v556_v5 = vld [vmem:[%s804_s0 + $0x8] sm:$0xff]   ;;  %vm633_vm0 = vmmov 0   ;;  %s462_s6 = sshll.u32 %s688_s3, 1  ;;  %v557_v7 = vld [vmem:[%s804_s0 + $0x10] sm:$0xff]  }
  0x19   : > { %492 = vmatprep.subr.bf16.mxu0 %v632_v3  ;;  %508 = vmatprep.mubr.msk.bf16.mxu0 %vm633_vm0, %v632_v3  ;;  %p172_p10 = scmp.lt.s32.totalorder %s462_s6, 3  ;;  %v558_v9 = vld [vmem:[%s804_s0 + $0x18] sm:$0xff]   ;;  %v559_v16 = vld [vmem:[%s804_s0 + $0x20] sm:$0xff]   ;;  %v560_v17 = vld [vmem:[%s804_s0 + $0x28] sm:$0xff]   ;;  %s168_s7 = sand.u32 1, %s622_s18  }
  0x1a   : > { %493 = vmatpush3.bf16.msra.mxu0 %v555_v2  ;;  %v191_v6 = vand.u32 127, %v190_v4  ;;  %v561_v18 = vld [vmem:[%s804_s0 + $0x30] sm:$0xff]   ;;  %v562_v19 = vld [vmem:[%s804_s0 + $0x38] sm:$0xff]   ;;  %v465_v21 = vld [vmem:[%s805_s1] ss:$0 sm:$0xff]  ;;  %s461_s10 = sshll.u32 %s168_s7, 4 }
  0x1b   : > { %494 = vmatprep.subr.bf16.mxu0 %v632_v3  ;;  %s816_s6 = smov (!%p172_p10, %s462_s6), 3  ;;  %v475_v46 = vld [vmem:[%s805_s1 + $0x1] ss:$0 sm:$0xff]  ;;  %v476_v48 = vld [vmem:[%s805_s1 + $0x2] ss:$0 sm:$0xff]  ;;  %s482_s13 = sshll.u32 %s688_s3, 8 }
  0x1c   : > { %s463_s9 = sshll.u32 %s816_s6, 2  ;;  %vm193_vm1 = vcmp.lt.s32.totalorder %v191_v6, 64  ;;  %s170_s14 = scalar_lea.vmem [#allocation7], %s461_s10 }
  0x1d   : > { %s175_s12 = scalar_lea.vmem %s806_s2, %s463_s9  ;;  %s395_s15 = sshll.u32 %s170_s14, 4  ;;  %s761_s15 = int_to_ptr.vmem [resolvable:$true] %s395_s15 }
  0x1e   : > { %495 = vmatpush3.bf16.msra.mxu0 %v556_v5  ;;  %v187_v8 = vld [vmem:[%s175_s12] sm:$0xff]   ;;  %s759_s23 = scalar_lea.hbm %s808_s4, %s482_s13  ;;  %s763_s24 = scalar_lea.sflag [#allocation8], %s168_s7 }
  0x1f   : > { %496 = vmatprep.subr.bf16.mxu0 %v632_v3  ;;  %v188_v10 = vunpack.c.l.bf16 %v187_v8  ;;  %v209_v11 = vunpack.c.h.bf16 %v187_v8  ;;  %s568_s28 = scalar_lea.vmem %s761_s15, 256  ;;  %s634_s3 = smov [#allocation7]  }
  0x20   : > { %p569_p11 = scmp.ne.s32.totalorder %s761_s15, %s568_s28  ;;  %s572_s29 = sshll.u32 %s634_s3, 4  ;;  %s573_s29 = int_to_ptr.vmem [resolvable:$false] %s572_s29 }
  0x21   : > { %v194_v12 = vsel %vm193_vm1, %v188_v10, %v665_v1  ;;  %v215_v13 = vsel %vm193_vm1, %v209_v11, %v665_v1  ;;  %s574_s30 = scalar_lea.vmem %s573_s29, 512  ;;  %p575_p0 = scmp.lt.s32.totalorder %s761_s15, %s573_s29 }
  0x22   : > { %497 = vmatpush3.bf16.msra.mxu0 %v557_v7  ;;  %v195_v14 = vpack.c.bf16 %v632_v3, %v194_v12  ;;  %v217_v15 = vpack.c.bf16 %v632_v3, %v215_v13  ;;  %p570_p12 = pnand %p569_p11, %p705_p5  ;;  %p576_p1 = scmp.lt.s32.totalorder %s574_s30, %s568_s28 }
  0x23   : > { %498 = vmatprep.subr.bf16.mxu0 %v632_v3 }
  0x24   : > { %197 = vst [vmem:[#allocation9] sm:$0xf] %v195_v14  ;;  %219 = vst [vmem:[#allocation9 + $0x4] sm:$0xf] %v217_v15  ;;  %p571_p13 = pneg %p570_p12  ;;  %p577_p2 = por %p576_p1, %p575_p0 }
  0x26   : > { %499 = vmatpush3.bf16.msra.mxu0 %v558_v9  ;;  %p578_p3 = pnand %p577_p2, %p571_p13 }
  0x27   : > { %500 = vmatprep.subr.bf16.mxu0 %v632_v3 }
  0x2a   : > { %501 = vmatpush3.bf16.msra.mxu0 %v559_v16 }
  0x2b   : > { %502 = vmatprep.subr.bf16.mxu0 %v632_v3  ;;  %v563_v20 = vld [vmem:[#allocation9] sm:$0xff]  }
  0x2e   : > { %503 = vmatpush3.bf16.msra.mxu0 %v560_v17 }
  0x2f   : > { %504 = vmatprep.subr.bf16.mxu0 %v632_v3 }
  0x32   : > { %505 = vmatpush3.bf16.msra.mxu0 %v561_v18 }
  0x33   : > { %506 = vmatprep.subr.bf16.mxu0 %v632_v3 }
  0x36   : > { %507 = vmatpush3.bf16.msra.mxu0 %v562_v19 }
  0x39   : > { %509 = vmatmul.mubr.bf16.vlgmr.msra.gmra.mrb[0].mxu0 %v563_v20 }
 0x10c   : > { %v332_v22 = vpop.f32.mrb[0].mxu0 }
 0x10d   : > { %v333_v23 = vadd.f32 %v465_v21, %v332_v22  ;;  %v510_v24 = vpop.f32.mrb[1].mxu0 }
 0x10e   : > { %v335_v25 = vpop.f32.mrb[2].mxu0 }
 0x10f   : > { %v336_v26 = vadd.f32 %v465_v21, %v335_v25  ;;  %339 = vadd.xlane.f32.xlu0 %v333_v23  ;;  %v511_v27 = vpop.f32.mrb[3].mxu0  ;;  %v343_v28 = vmul.f32 %v333_v23, %v333_v23 }
 0x111   : > { %345 = vadd.xlane.f32.xlu1 %v343_v28  ;;  %v344_v29 = vmul.f32 %v336_v26, %v336_v26 }
 0x113   : > { %341 = vadd.xlane.f32.xlu0 %v336_v26 }
 0x115   : > { %347 = vadd.xlane.f32.xlu1 %v344_v29 }
 0x19c   : > { %v340_v30 = vpop.xlane.xlu0 %339 }
 0x19d   : > { %v349_v31 = vmul.f32 0.0078125, %v340_v30 }
 0x19e   : > { %v346_v32 = vpop.xlane.xlu1 %345 }
 0x19f   : > { %v353_v33 = vmul.f32 %v349_v31, %v349_v31  ;;  %v351_v34 = vmul.f32 0.0078125, %v346_v32  ;;  %v361_v44 = vsub.f32 %v333_v23, %v349_v31 }
 0x1a0   : > { %v342_v35 = vpop.xlane.xlu0 %341 }
 0x1a1   : > { %v355_v36 = vsub.f32 %v351_v34, %v353_v33  ;;  %v350_v37 = vmul.f32 0.0078125, %v342_v35 }
 0x1a2   : > { %v348_v38 = vpop.xlane.xlu1 %347 }
 0x1a3   : > { %v357_v39 = vadd.f32 1e-05, %v355_v36  ;;  %v354_v40 = vmul.f32 %v350_v37, %v350_v37  ;;  %v352_v41 = vmul.f32 0.0078125, %v348_v38  ;;  %v362_v49 = vsub.f32 %v336_v26, %v350_v37 }
 0x1a5   : > { %564 = vrsqrt.f32 %v357_v39  ;;  %v356_v42 = vsub.f32 %v352_v41, %v354_v40 }
 0x1a7   : > { %v358_v43 = vadd.f32 1e-05, %v356_v42 }
 0x1a9   : > { %566 = vrsqrt.f32 %v358_v43 }
 0x1af   : > { %v565_v45 = vpop.eup %564 }
 0x1b0   : > { %v363_v47 = vmul.f32 %v565_v45, %v361_v44 }
 0x1b2   : > { %v370_v50 = vmul.f32 %v475_v46, %v363_v47 }
 0x1b3   : > { %v567_v51 = vpop.eup %566 }
 0x1b4   : > { %v364_v52 = vmul.f32 %v567_v51, %v362_v49  ;;  %v377_v53 = vadd.f32 %v476_v48, %v370_v50 }
 0x1b6   : > { %v371_v54 = vmul.f32 %v475_v46, %v364_v52  ;;  %379 = vst [vmem:[%s170_s14] sm:$0xff] %v377_v53 }
 0x1b8   : > { %v378_v55 = vadd.f32 %v476_v48, %v371_v54 }
 0x1ba   : > { %380 = vst [vmem:[%s170_s14 + $0x8] sm:$0xff] %v378_v55 }
 0x1bb   : > { %581 = shalt.err (!%p578_p3)
}
 0x1bc   : > { %s582_s5 = scalar_lea.hbm %s759_s23, 256  ;;  %s586_s8 = scalar_lea.hbm %s808_s4, 512 }
 0x1bd   : > { %p583_p4 = scmp.ne.s32.totalorder %s759_s23, %s582_s5  ;;  %p587_p9 = scmp.lt.u32.totalorder %s759_s23, %s808_s4 }
 0x1be   : > { %p588_p10 = scmp.lt.u32.totalorder %s586_s8, %s582_s5  ;;  %p590_p12 = scmp.lt.u32.totalorder %s582_s5, %s759_s23 }
 0x1bf   : > { %p584_p7 = pnand %p583_p4, %p705_p5 }
 0x1c0   : > { %p589_p11 = por %p588_p10, %p587_p9 }
 0x1c1   : > { %p585_p8 = pneg %p584_p7 }
 0x1c2   : > { %p591_p13 = por %p590_p12, %p589_p11 }
 0x1c4   : > { %p592_p0 = pnand %p591_p13, %p585_p8 }
 0x1c6   : > { %595 = shalt.err (!%p592_p0)
}
 0x1c7   : > { %s635_s11 = smov 128   ;;  %s636_s12 = smov 8  }
 0x1c8   : > { %512 = dma.vmem_to_hbm [thread:$0]  (%p705_p5), %s761_s15, 256, %s759_s23, %s763_s24, %s635_s11, %s635_s11, %s636_s12  }
 0x1c9 PF: > { %p518_p1 = scmp.ge.s32.totalorder %s630_s20, 2  ;;  %s410_s13 = sand.u32 1, %s618_s17  }
 0x1ca   : > { %s411_s14 = scalar_lea.sflag [#allocation8], %s410_s13 }
 0x1cb   : > { %p515_p2 = pnand %p518_p1, %p709_p6 }
 0x1cd   : > { %613 = dma.done.wait (!%p515_p2), %s411_s14, 256  }
 0x1ce   : > { %615 = vsyncadd (!%p515_p2), %s411_s14, 4294967040  ;;  %p19_p3 = scmp.ge.s32.totalorder %s692_s22, 4   ;;  %s811_s17 = smov %s622_s18 }
 0x1cf   : > { %s812_s18 = smov %s626_s19  ;;  %s813_s19 = smov %s703_s25 }
 0x1d0   : > { %s814_s20 = smov %s692_s22  ;;  %21 = sbr.rel (!%p19_p3) target bundleno = 6 (0x6), region = 69 }
 0x1d7   :  { %416 = vsyncpa [#allocation8], 1 }
 0x1d8   :  { %418 = vsyncpa [#allocation8 + $0x1], 1 }

</bundles_post_ra>
